<compile_context>
chip_gen: v7x
topology: tpu7x:2x2x1
jax: 0.10.0
libtpu: 0.0.40
codegen_flags: <defaults>
</compile_context>

<pallas_src>
import functools
import math

import jax
import jax.numpy as jnp
from jax.experimental import pallas as pl
from jax.experimental.pallas import tpu as pltpu

HIDDEN = 30                      # L1 output features (as in the PyTorch module)
_SPLIT_MIN_PACKED_ROWS = 2048    # per-TensorCore minimum before splitting into >=2 tiles


def _round_up(n, m):
    return ((n + m - 1) // m) * m


def _block_diag(m, n):
    """Block-diagonal matrix with n copies of 2-D `m` (host-side glue, tiny)."""
    r, c = m.shape
    eye = jnp.eye(n, dtype=m.dtype)
    return (eye[:, None, :, None] * m[None, :, None, :]).reshape(n * r, n * c)


def _sigmoid_tanh(x):
    # sigmoid(x) == 0.5 * tanh(0.5 * x) + 0.5 : single EUP op instead of exp+recip.
    return 0.5 * jnp.tanh(0.5 * x) + 0.5


def _attention_kernel(x_ref, w1_ref, b1_ref, w2_ref, b2_ref, o_ref):
    # x_ref : (BMP, PACK*D)      packed input rows (VMEM tile)
    # w1_ref: (PACK*D, PACK*H)   block-diagonal W1^T (VMEM, resident)
    # b1_ref: (1, PACK*H)        tiled L1 bias (VMEM, resident)
    # w2_ref: (PACK, PACK*H)     block-diagonal W2 (VMEM, resident)
    # b2_ref: (1,)               L2 bias (SMEM scalar)
    # o_ref : (1, PACK, BMP)     lane-dense output tile (rows along lanes)
    x = x_ref[...]
    h = jnp.dot(x, w1_ref[...], preferred_element_type=jnp.float32) + b1_ref[...]
    h = _sigmoid_tanh(h)                                   # (BMP, PACK*H)
    # Layer 2: (PACK, PACK*H) contracted with (BMP, PACK*H) on the hidden axis
    # -> (PACK, BMP): result is lane-major over packed rows, so the store is
    # lane-dense instead of narrow masked stores.
    o = jax.lax.dot_general(
        w2_ref[...], h,
        dimension_numbers=(((1,), (1,)), ((), ())),
        preferred_element_type=jnp.float32,
    )
    o = _sigmoid_tanh(o + b2_ref[0])                       # (PACK, BMP)
    o_ref[...] = o[None].astype(o_ref.dtype)               # (1, PACK, BMP)


@functools.partial(jax.jit, static_argnames=("block_rows",))
def attention_forward(x, w1, b1, w2, b2, *, block_rows=32768):
    """x: (..., D) float32. Returns (..., 1) float32, matching PyTorch semantics."""
    orig_shape = x.shape
    d = orig_shape[-1]
    rows = math.prod(orig_shape[:-1])
    x2 = x.reshape(rows, d)

    # Lane packing factor: pack `pack` consecutive rows into one 128-lane row
    # when the embedding dim divides 128 (D=32 -> pack=4). pack=1 falls back to
    # the plain layout for other dims.
    pack = 128 // d if (d <= 128 and 128 % d == 0) else 1

    rows_pad = _round_up(max(rows, 1), pack)
    if rows_pad != rows:
        # Only when rows % pack != 0; pads <=pack-1 junk rows (sliced off below).
        x2 = jnp.pad(x2, ((0, rows_pad - rows), (0, 0)))
    rows_p = rows_pad // pack
    xp = x2.reshape(rows_p, pack * d)          # free, contiguous view when no pad

    hidden_p = pack * HIDDEN
    w1_bd = _block_diag(w1.T, pack)            # (pack*D, pack*HIDDEN)
    w2_bd = _block_diag(w2, pack)              # (pack,   pack*HIDDEN)
    b1_t = jnp.tile(b1.reshape(1, HIDDEN), (1, pack))
    b2_1d = b2.reshape(1)

    # Packed-row tile size: as big as possible to amortize grid-step overhead,
    # capped so (a) >=2 tiles exist for large inputs (both v7x TCs get work)
    # and (b) the double-buffered x tile stays well under scoped VMEM limits.
    bmp_limit = max(8, block_rows // pack)
    if rows_p >= 2 * _SPLIT_MIN_PACKED_ROWS:
        bmp_limit = min(bmp_limit, _round_up(pl.cdiv(rows_p, 2), 8))
    if rows_p <= 8:
        bmp = rows_p                           # full-array block, no ragged edge
    else:
        bmp = min(bmp_limit, _round_up(rows_p, 8))
    num_tiles = pl.cdiv(rows_p, bmp)           # ragged last block handled by Pallas

    out = pl.pallas_call(
        _attention_kernel,
        out_shape=jax.ShapeDtypeStruct((num_tiles, pack, bmp), jnp.float32),
        grid_spec=pltpu.PrefetchScalarGridSpec(
            num_scalar_prefetch=0,
            grid=(num_tiles,),
            in_specs=[
                pl.BlockSpec((bmp, pack * d), lambda i: (i, 0)),       # packed x tile
                pl.BlockSpec((pack * d, hidden_p), lambda i: (0, 0)),  # W1_bd (resident)
                pl.BlockSpec((1, hidden_p), lambda i: (0, 0)),         # b1 tiled (resident)
                pl.BlockSpec((pack, hidden_p), lambda i: (0, 0)),      # W2_bd (resident)
                pl.BlockSpec(memory_space=pltpu.MemorySpace.SMEM),     # b2 scalar
            ],
            out_specs=pl.BlockSpec((1, pack, bmp), lambda i: (i, 0, 0)),
        ),
        compiler_params=pltpu.CompilerParams(
            dimension_semantics=("parallel",),
        ),
    )(xp, w1_bd, b1_t, w2_bd, b2_1d)

    # Output element (t, j, p) is unpacked row t*(pack*bmp) + pack*p + j:
    # restore row-major order with a tiny host-side transpose, drop junk rows.
    out = jnp.transpose(out, (0, 2, 1)).reshape(-1)[:rows]
    return out.reshape(orig_shape[:-1] + (1,))


def init_params(key, embedding_dim):
    """Deterministic init matching PyTorch nn.Linear shapes/default-ish scale."""
    k1, k2, k3, k4 = jax.random.split(key, 4)
    bound1 = 1.0 / jnp.sqrt(embedding_dim)
    bound2 = 1.0 / jnp.sqrt(HIDDEN)
    w1 = jax.random.uniform(k1, (HIDDEN, embedding_dim), jnp.float32, -bound1, bound1)
    b1 = jax.random.uniform(k2, (HIDDEN,), jnp.float32, -bound1, bound1)
    w2 = jax.random.uniform(k3, (1, HIDDEN), jnp.float32, -bound2, bound2)
    b2 = jax.random.uniform(k4, (1,), jnp.float32, -bound2, bound2)
    return w1, b1, w2, b2


def _reference(x, w1, b1, w2, b2):
    return jax.nn.sigmoid(jax.nn.sigmoid(x @ w1.T + b1) @ w2.T + b2)


if __name__ == "__main__":
    key = jax.random.PRNGKey(0)
    kx, kp, kx2, kx3 = jax.random.split(key, 4)

    batch, seq, embedding_dim = 2, 8, 32
    w1, b1, w2, b2 = init_params(kp, embedding_dim)

    # Main small-shape check.
    x = jax.random.normal(kx, (batch, seq, embedding_dim), jnp.float32)
    out = jax.block_until_ready(attention_forward(x, w1, b1, w2, b2))
    ref = _reference(x, w1, b1, w2, b2)
    assert out.shape == (batch, seq, 1), out.shape
    assert jnp.allclose(out, ref, atol=1e-5, rtol=1e-5), float(jnp.max(jnp.abs(out - ref)))

    # Ragged row count (15 rows, not a multiple of the 4-row packing).
    x_r = jax.random.normal(kx2, (3, 5, embedding_dim), jnp.float32)
    out_r = jax.block_until_ready(attention_forward(x_r, w1, b1, w2, b2))
    ref_r = _reference(x_r, w1, b1, w2, b2)
    assert out_r.shape == (3, 5, 1), out_r.shape
    assert jnp.allclose(out_r, ref_r, atol=1e-5, rtol=1e-5), float(jnp.max(jnp.abs(out_r - ref_r)))

    # Multi-tile path (small block_rows override): exercises grid>1, a ragged
    # last tile, and the packed-row reordering across tiles.
    x_m = jax.random.normal(kx3, (25, 8, embedding_dim), jnp.float32)   # 200 rows
    out_m = jax.block_until_ready(attention_forward(x_m, w1, b1, w2, b2, block_rows=64))
    ref_m = _reference(x_m, w1, b1, w2, b2)
    assert out_m.shape == (25, 8, 1), out_m.shape
    assert jnp.allclose(out_m, ref_m, atol=1e-5, rtol=1e-5), float(jnp.max(jnp.abs(out_m - ref_m)))

    print("KERNEL_OK")
</pallas_src>

<mosaic_0001>
module attributes {stable_mosaic.version = 11 : i64} {
  func.func @_attention_kernel(%arg0: i32, %arg1: memref<4x128xf32, #tpu.memory_space<vmem>>, %arg2: memref<128x120xf32, #tpu.memory_space<vmem>>, %arg3: memref<1x120xf32, #tpu.memory_space<vmem>>, %arg4: memref<4x120xf32, #tpu.memory_space<vmem>>, %arg5: memref<1xf32, #tpu.memory_space<smem>>, %arg6: memref<1x4x4xf32, #tpu.memory_space<vmem>>) attributes {dimension_semantics = [#tpu.dimension_semantics<parallel>], iteration_bounds = array<i64: 1>, scalar_prefetch = 0 : i64, scratch_operands = 0 : i64, tpu.core_type = #tpu.core_type<tc>, window_params = [{transform_indices = @transform_0, window_bounds = array<i64: 4, 128>}, {pipeline_mode = #tpu.pipeline_mode<synchronous>, transform_indices = @transform_1, window_bounds = array<i64: 128, 120>}, {pipeline_mode = #tpu.pipeline_mode<synchronous>, transform_indices = @transform_2, window_bounds = array<i64: 1, 120>}, {pipeline_mode = #tpu.pipeline_mode<synchronous>, transform_indices = @transform_3, window_bounds = array<i64: 4, 120>}, {transform_indices = @transform_4, window_bounds = array<i64: 1>}, {transform_indices = @transform_5, window_bounds = array<i64: 1, 4, 4>}]} {
    %c0 = arith.constant 0 : index
    %c0_0 = arith.constant 0 : index
    %0 = vector.load %arg1[%c0, %c0_0] : memref<4x128xf32, #tpu.memory_space<vmem>>, vector<4x128xf32>
    %c0_1 = arith.constant 0 : index
    %c0_2 = arith.constant 0 : index
    %1 = vector.load %arg2[%c0_1, %c0_2] : memref<128x120xf32, #tpu.memory_space<vmem>>, vector<128x120xf32>
    %cst = arith.constant dense<0.000000e+00> : vector<4x120xf32>
    %2 = tpu.matmul %0, %1, %cst {dimension_numbers = #tpu.dot_dimension_numbers<[1], [0], [0], [1], [0, 0, 1, 1], [], []>} : vector<4x128xf32>, vector<128x120xf32>, vector<4x120xf32> -> vector<4x120xf32>
    %c0_3 = arith.constant 0 : index
    %c0_4 = arith.constant 0 : index
    %3 = vector.load %arg3[%c0_3, %c0_4] : memref<1x120xf32, #tpu.memory_space<vmem>>, vector<1x120xf32>
    %4 = vector.broadcast %3 : vector<1x120xf32> to vector<4x120xf32>
    %5 = arith.addf %2, %4 : vector<4x120xf32>
    %cst_5 = arith.constant 5.000000e-01 : f32
    %6 = vector.broadcast %cst_5 : f32 to vector<4x120xf32>
    %7 = arith.mulf %6, %5 : vector<4x120xf32>
    %8 = math.tanh %7 : vector<4x120xf32>
    %cst_6 = arith.constant 5.000000e-01 : f32
    %9 = vector.broadcast %cst_6 : f32 to vector<4x120xf32>
    %10 = arith.mulf %9, %8 : vector<4x120xf32>
    %cst_7 = arith.constant 5.000000e-01 : f32
    %11 = vector.broadcast %cst_7 : f32 to vector<4x120xf32>
    %12 = arith.addf %10, %11 : vector<4x120xf32>
    %c0_8 = arith.constant 0 : index
    %c0_9 = arith.constant 0 : index
    %13 = vector.load %arg4[%c0_8, %c0_9] : memref<4x120xf32, #tpu.memory_space<vmem>>, vector<4x120xf32>
    %cst_10 = arith.constant dense<0.000000e+00> : vector<4x4xf32>
    %14 = tpu.matmul %13, %12, %cst_10 {dimension_numbers = #tpu.dot_dimension_numbers<[1], [1], [0], [0], [0, 0, 1, 0], [], []>} : vector<4x120xf32>, vector<4x120xf32>, vector<4x4xf32> -> vector<4x4xf32>
    %c0_11 = arith.constant 0 : index
    %15 = memref.load %arg5[%c0_11] : memref<1xf32, #tpu.memory_space<smem>>
    %16 = vector.broadcast %15 : f32 to vector<4x4xf32>
    %17 = arith.addf %14, %16 : vector<4x4xf32>
    %cst_12 = arith.constant 5.000000e-01 : f32
    %18 = vector.broadcast %cst_12 : f32 to vector<4x4xf32>
    %19 = arith.mulf %18, %17 : vector<4x4xf32>
    %20 = math.tanh %19 : vector<4x4xf32>
    %cst_13 = arith.constant 5.000000e-01 : f32
    %21 = vector.broadcast %cst_13 : f32 to vector<4x4xf32>
    %22 = arith.mulf %21, %20 : vector<4x4xf32>
    %cst_14 = arith.constant 5.000000e-01 : f32
    %23 = vector.broadcast %cst_14 : f32 to vector<4x4xf32>
    %24 = arith.addf %22, %23 : vector<4x4xf32>
    %25 = vector.shape_cast %24 : vector<4x4xf32> to vector<1x4x4xf32>
    %c0_15 = arith.constant 0 : index
    %c0_16 = arith.constant 0 : index
    %c0_17 = arith.constant 0 : index
    %26 = vector.load %arg6[%c0_15, %c0_16, %c0_17] : memref<1x4x4xf32, #tpu.memory_space<vmem>>, vector<1x4x4xf32>
    tpu.vector_store %arg6[%c0_15, %c0_16, %c0_17], %25 {strides = array<i32>} : memref<1x4x4xf32, #tpu.memory_space<vmem>>, vector<1x4x4xf32>,
    return
  }
  func.func @transform_0(%arg0: i32) -> (i32, i32) {
    %c0_i32 = arith.constant 0 : i32
    %c0_i32_0 = arith.constant 0 : i32
    return %arg0, %c0_i32 : i32, i32
  }
  func.func @transform_1(%arg0: i32) -> (i32, i32) {
    %c0_i32 = arith.constant 0 : i32
    %c0_i32_0 = arith.constant 0 : i32
    %c0_i32_1 = arith.constant 0 : i32
    return %c0_i32, %c0_i32_0 : i32, i32
  }
  func.func @transform_2(%arg0: i32) -> (i32, i32) {
    %c0_i32 = arith.constant 0 : i32
    %c0_i32_0 = arith.constant 0 : i32
    %c0_i32_1 = arith.constant 0 : i32
    return %c0_i32, %c0_i32_0 : i32, i32
  }
  func.func @transform_3(%arg0: i32) -> (i32, i32) {
    %c0_i32 = arith.constant 0 : i32
    %c0_i32_0 = arith.constant 0 : i32
    %c0_i32_1 = arith.constant 0 : i32
    return %c0_i32, %c0_i32_0 : i32, i32
  }
  func.func @transform_4(%arg0: i32) -> i32 {
    %c0_i32 = arith.constant 0 : i32
    %c0_i32_0 = arith.constant 0 : i32
    return %c0_i32 : i32
  }
  func.func @transform_5(%arg0: i32) -> (i32, i32, i32) {
    %c0_i32 = arith.constant 0 : i32
    %c0_i32_0 = arith.constant 0 : i32
    %c0_i32_1 = arith.constant 0 : i32
    return %arg0, %c0_i32, %c0_i32_0 : i32, i32, i32
  }
}

</mosaic_0001>

<bundles_post_ra>
// kernel: attention_forward.1
= control target key start
LH: loop header
LB: loop body
LE: loop exit
PB: predicated region body
PF: predicated region fallthrough
CT: control target
= control target key end

     0   :  { %v302_v0 = vmov 0.0|0.0   ;;  %vm303_vm0 = vmmov 0   ;;  %v304_v4 = vmov 0.0   ;;  %vm122_vm1 = vcmask 982016   ;;  %s398_s1 = inlined_call_operand.vmem [shape: f32[128,120], index: 1, kind: input, shape index: {}]   ;;  %s399_s0 = inlined_call_operand.vmem [shape: f32[4,128], index: 0, kind: input, shape index: {}]   ;;  %s400_s2 = inlined_call_operand.vmem [shape: f32[1,120], index: 2, kind: input, shape index: {}]   ;;  %s401_s3 = inlined_call_operand.vmem [shape: f32[4,120], index: 3, kind: input, shape index: {}]   ;;  %s402_s4 = inlined_call_operand.<no memory space> [shape: f32[1], index: 4, kind: input, shape index: {}]   ;;  %s403_s5 = inlined_call_operand.vmem [shape: f32[1,4,4], index: 5, kind: output, shape index: {}]  }
   0x1   :  { %271 = vmatprep.subr.bf16.mxu0 %v302_v0  ;;  %v22_v1 = vld [vmem:[%s398_s1] sm:$0xff]  ;;  %v23_v2 = vld [vmem:[%s398_s1 + $0x8] sm:$0xff]  ;;  %v24_v3 = vld [vmem:[%s398_s1 + $0x10] sm:$0xff]  ;;  %263 = vmatprep.mubr.msk.f32.mxu0 %vm303_vm0, %v304_v4  ;;  %v121_v36 = vstv %s402_s4  ;;  %vm203_vm2 = vcmask 27648  }
   0x2   :  { %v272_v5 = vpack.c.bf16 %v23_v2, %v22_v1  ;;  %v25_v6 = vld [vmem:[%s398_s1 + $0x18] sm:$0xff]  ;;  %266 = vmatprep.subr.mxu1 %v304_v4  ;;  %268 = vmatprep.mubr.msk.f32.mxu1 %vm303_vm0, %v304_v4  ;;  %v26_v8 = vld [vmem:[%s398_s1 + $0x20] sm:$0xff]  ;;  %v27_v9 = vld [vmem:[%s398_s1 + $0x28] sm:$0xff] }
   0x3   :  { %v275_v7 = vpack.c.bf16 %v25_v6, %v24_v3  ;;  %v278_v10 = vpack.c.bf16 %v27_v9, %v26_v8  ;;  %v28_v11 = vld [vmem:[%s398_s1 + $0x30] sm:$0xff]  ;;  %v29_v12 = vld [vmem:[%s398_s1 + $0x38] sm:$0xff]  ;;  %v30_v14 = vld [vmem:[%s398_s1 + $0x40] sm:$0xff] }
   0x4   :  { %273 = vmatpush3.bf16.msra.mxu0 %v272_v5  ;;  %v281_v13 = vpack.c.bf16 %v29_v12, %v28_v11  ;;  %v31_v15 = vld [vmem:[%s398_s1 + $0x48] sm:$0xff]  ;;  %v32_v17 = vld [vmem:[%s398_s1 + $0x50] sm:$0xff]  ;;  %v33_v18 = vld [vmem:[%s398_s1 + $0x58] sm:$0xff] }
   0x5   :  { %274 = vmatprep.subr.bf16.mxu0 %v302_v0  ;;  %v284_v16 = vpack.c.bf16 %v31_v15, %v30_v14  ;;  %v287_v19 = vpack.c.bf16 %v33_v18, %v32_v17  ;;  %v34_v20 = vld [vmem:[%s398_s1 + $0x60] sm:$0xff]  ;;  %v35_v21 = vld [vmem:[%s398_s1 + $0x68] sm:$0xff]  ;;  %v36_v23 = vld [vmem:[%s398_s1 + $0x70] sm:$0xff] }
   0x6   :  { %v290_v22 = vpack.c.bf16 %v35_v21, %v34_v20  ;;  %v37_v24 = vld [vmem:[%s398_s1 + $0x78] sm:$0xff]  ;;  %v21_v26 = vld [vmem:[%s399_s0] sm:$0xf] }
   0x7   :  { %v293_v25 = vpack.c.bf16 %v37_v24, %v36_v23  ;;  %v209_v27 = vld [vmem:[%s400_s2] ss:$0 sm:$0xff] }
   0x8   :  { %276 = vmatpush3.bf16.msra.mxu0 %v275_v7  ;;  %v119_v35 = vld [vmem:[%s401_s3] sm:$0xf] }
   0x9   :  { %277 = vmatprep.subr.bf16.mxu0 %v302_v0 }
   0xc   :  { %279 = vmatpush3.bf16.msra.mxu0 %v278_v10 }
   0xd   :  { %280 = vmatprep.subr.bf16.mxu0 %v302_v0 }
  0x10   :  { %282 = vmatpush3.bf16.msra.mxu0 %v281_v13 }
  0x11   :  { %283 = vmatprep.subr.bf16.mxu0 %v302_v0 }
  0x14   :  { %285 = vmatpush3.bf16.msra.mxu0 %v284_v16 }
  0x15   :  { %286 = vmatprep.subr.bf16.mxu0 %v302_v0 }
  0x18   :  { %288 = vmatpush3.bf16.msra.mxu0 %v287_v19 }
  0x19   :  { %289 = vmatprep.subr.bf16.mxu0 %v302_v0 }
  0x1c   :  { %291 = vmatpush3.bf16.msra.mxu0 %v290_v22 }
  0x1d   :  { %292 = vmatprep.subr.bf16.mxu0 %v302_v0 }
  0x20   :  { %294 = vmatpush3.bf16.msra.mxu0 %v293_v25 }
  0x23   :  { %264 = vmatmul.mubr.f32.vlgmr.msra.gmra.mrb[0].mxu0 %v21_v26 }
  0xf6   :  { %v111_v28 = vpop.f32.mrb[0].mxu0 }
  0xf7   :  { %v112_v29 = vadd.f32 %v209_v27, %v111_v28  ;;  %v265_v30 = vpop.f32.mrb[1].mxu0 }
  0xf9   :  { %v115_v31 = vmul.f32 0.5, %v112_v29 }
  0xfb   :  { %298 = vtanh.f32 %v115_v31 }
 0x105   :  { %v299_v32 = vpop.eup %298 }
 0x106   :  { %v117_v33 = vmul.f32 0.5, %v299_v32 }
 0x108   :  { %v118_v34 = vadd.f32 0.5, %v117_v33 }
 0x10a   :  { %267 = vmatpush3.xpose.msk.msra.mxu1 %vm122_vm1, %v118_v34 }
 0x10d   :  { %269 = vmatmul.mubr.msk.f32.vlgmr.msra.gmra.mrb[0].mxu1 %vm122_vm1, %v119_v35 }
 0x1e0   :  { %v195_v37 = vpop.f32.mrb[0].mxu1 }
 0x1e1   :  { %v196_v38 = vadd.f32 %v195_v37, %v121_v36  ;;  %v270_v39 = vpop.f32.mrb[1].mxu1 }
 0x1e3   :  { %v199_v40 = vmul.f32 0.5, %v196_v38 }
 0x1e5   :  { %300 = vtanh.f32 %v199_v40 }
 0x1ef   :  { %v301_v41 = vpop.eup %300 }
 0x1f0   :  { %v201_v42 = vmul.f32 0.5, %v301_v41 }
 0x1f2   :  { %v202_v43 = vadd.f32 0.5, %v201_v42 }
 0x1f4   :  { %204 = vst.msk [vmem:[%s403_s5] sm:$0xf] %vm203_vm2, %v202_v43 }

</bundles_post_ra>
